<compile_context>
chip_gen: v7x
topology: tpu7x:2x2x1
jax: 0.10.0
libtpu: 0.0.40
codegen_flags: <defaults>
</compile_context>

<pallas_src>
import jax
import jax.numpy as jnp
from jax.experimental import pallas as pl
from jax.experimental.pallas import tpu as pltpu


def _round_up(x, m):
    return ((x + m - 1) // m) * m


def _cdiv(a, b):
    return -(-a // b)


# ---------------------------------------------------------------------------
# Pallas kernel
# ---------------------------------------------------------------------------
def _lc2d_kernel(xu_ref, w_ref, b_ref, o_ref):
    # xu_ref : (N, tile_d, TL)  stream dtype   -- D on sublanes, L on lanes
    # w_ref  : (O, tile_d, TL)  stream dtype
    # b_ref  : (O, TL)          float32
    # o_ref  : (N, O, TL)       float32, resident across the D (k) grid axis
    n_batch = xu_ref.shape[0]
    n_out = w_ref.shape[0]

    @pl.when(pl.program_id(1) == 0)
    def _init():
        # Seed the resident output block with the per-location bias: no scratch
        # accumulator and no finalize pass needed (output is already f32).
        o_ref[...] = jnp.broadcast_to(
            b_ref[...].astype(jnp.float32)[None], o_ref.shape)

    # Small static loops over the (N x O) pairs.  The D contraction inside each
    # pair is fully vectorized: elementwise multiply on the VPU, then a
    # sublane-axis sum (cross-vreg adds + XLU sublane reduce) -> one lane-dense
    # (1, TL) row.  N is the outer loop so the (larger) per-pair weight cast is
    # the only repeated cast.
    for n in range(n_batch):
        x_n = xu_ref[n].astype(jnp.float32)                # (tile_d, TL)
        rows = []
        for o in range(n_out):
            w_o = w_ref[o].astype(jnp.float32)             # (tile_d, TL)
            rows.append(jnp.sum(x_n * w_o, axis=0, keepdims=True))   # (1, TL)
        o_ref[n] = o_ref[n] + jnp.concatenate(rows, axis=0)          # (O, TL)


def locally_connected_2d_pallas(xu_ndl, w_odl, b_ol, *, tile_d, tile_l,
                                vmem_limit_bytes):
    """xu_ndl: (N, D_pad, L_pad) stream dtype (zero padded per call)
       w_odl : (O, D_pad, L_pad) stream dtype (zero padded once at init)
       b_ol  : (O, L_pad)        float32
       returns (N, O, L_pad) float32."""
    N, D_pad, L_pad = xu_ndl.shape
    O = w_odl.shape[0]
    assert w_odl.shape == (O, D_pad, L_pad), (w_odl.shape, (O, D_pad, L_pad))
    assert b_ol.shape == (O, L_pad), (b_ol.shape, (O, L_pad))
    assert D_pad % tile_d == 0 and L_pad % tile_l == 0

    grid = (L_pad // tile_l, D_pad // tile_d)   # (parallel spatial, reduction)

    cost = pl.CostEstimate(
        flops=2 * N * D_pad * L_pad * O,
        transcendentals=0,
        bytes_accessed=int(xu_ndl.nbytes + w_odl.nbytes + b_ol.nbytes
                           + 4 * N * O * L_pad),
    )

    return pl.pallas_call(
        _lc2d_kernel,
        out_shape=jax.ShapeDtypeStruct((N, O, L_pad), jnp.float32),
        grid_spec=pltpu.PrefetchScalarGridSpec(
            num_scalar_prefetch=0,
            grid=grid,
            in_specs=[
                pl.BlockSpec((N, tile_d, tile_l), lambda i, k: (0, k, i)),
                pl.BlockSpec((O, tile_d, tile_l), lambda i, k: (0, k, i)),
                pl.BlockSpec((O, tile_l), lambda i, k: (0, i)),
            ],
            out_specs=pl.BlockSpec((N, O, tile_l), lambda i, k: (0, 0, i)),
        ),
        compiler_params=pltpu.CompilerParams(
            dimension_semantics=("parallel", "arbitrary"),
            vmem_limit_bytes=vmem_limit_bytes,
        ),
        cost_estimate=cost,
    )(xu_ndl, w_odl, b_ol)


# ---------------------------------------------------------------------------
# Tile selection (done once at module init).
# ---------------------------------------------------------------------------
def choose_lc2d_tiles(D, L, out_channels, batch_hint, stream_dtype):
    """Returns (tile_d, tile_l, D_pad, L_pad, vmem_limit_bytes)."""
    itemsize = jnp.dtype(stream_dtype).itemsize
    sub = 8 * (4 // itemsize)                 # sublane quantum: 8 f32 / 16 bf16

    # L tiling: lane-dense, <= 1024 lanes per tile, and >= 2 tiles when there is
    # enough work so both v7x TensorCores get grid steps.
    l_blocks = _cdiv(L, 128)
    min_tiles = 2 if l_blocks >= 2 else 1
    n_l_tiles = max(min_tiles, _cdiv(l_blocks, 8))
    tile_l = _cdiv(l_blocks, n_l_tiles) * 128
    L_pad = _round_up(L, tile_l)

    # D tiling: a multiple of the sublane quantum that divides round_up(D, sub)
    # -> minimal zero padding of both streamed operands.  Capped so the per-pair
    # (tile_d, tile_l) f32 product stays register friendly.
    D_q = _round_up(D, sub)
    cands = sorted({t for t in range(sub, min(64, D_q) + 1, sub)
                    if D_q % t == 0} | {sub}, reverse=True)

    def vmem_bytes(td, tl):
        # Sublane-aware accounting: td is the sublane dim of xu/w blocks (already
        # a quantum multiple); O pads to 8 sublanes in the bias/output blocks.
        xu_blk = batch_hint * td * tl * itemsize
        w_blk = out_channels * td * tl * itemsize
        b_blk = _round_up(out_channels, 8) * tl * 4
        o_blk = batch_hint * _round_up(out_channels, 8) * tl * 4
        return 2 * (xu_blk + w_blk + b_blk + o_blk)      # double buffered

    budget = 20 * 2**20
    tile_d = None
    for t in cands:
        if t * tile_l <= 32 * 1024 and vmem_bytes(t, tile_l) <= budget:
            tile_d = t
            break
    if tile_d is None:
        tile_d = cands[-1]
        while tile_l > 128 and vmem_bytes(tile_d, tile_l) > budget:
            tile_l -= 128
        L_pad = _round_up(L, tile_l)
    D_pad = _round_up(D_q, tile_d)            # == D_q when tile_d divides D_q

    vmem_limit = int(min(32 * 2**20,
                         max(2 * vmem_bytes(tile_d, tile_l), 16 * 2**20)))
    return tile_d, tile_l, D_pad, L_pad, vmem_limit


# ---------------------------------------------------------------------------
# Plain-JAX glue: unfold (im2col) matching torch.nn.functional.unfold ordering.
# ---------------------------------------------------------------------------
def unfold_nchw(x, kernel_size, dilation, padding, stride):
    N, C, H, W = x.shape
    kh, kw = kernel_size
    dh, dw = dilation
    ph, pw = padding
    sh, sw = stride
    oh = (H + 2 * ph - dh * (kh - 1) - 1) // sh + 1
    ow = (W + 2 * pw - dw * (kw - 1) - 1) // sw + 1
    xp = jnp.pad(x, ((0, 0), (0, 0), (ph, ph), (pw, pw)))
    cols = []
    for i in range(kh):
        for j in range(kw):
            patch = xp[:, :, i * dh:i * dh + sh * oh:sh,
                           j * dw:j * dw + sw * ow:sw]           # (N, C, oh, ow)
            cols.append(patch)
    col = jnp.stack(cols, axis=2)                                # (N, C, kh*kw, oh, ow)
    # channel-major (torch order): d = c*(kh*kw) + i*kw + j
    return col.reshape(N, C * kh * kw, oh * ow), oh, ow


def xavier_uniform(key, shape):
    # Matches torch.nn.init.xavier_uniform_ fan computation.
    receptive = 1
    for s in shape[2:]:
        receptive *= s
    fan_in = shape[1] * receptive
    fan_out = shape[0] * receptive
    bound = (6.0 / (fan_in + fan_out)) ** 0.5
    return jax.random.uniform(key, shape, jnp.float32, -bound, bound)


class LocallyConnected2DPallas:
    def __init__(self, key, input_shape, in_channels, out_channels,
                 kernel_size, dilation, padding, stride,
                 stream_dtype=jnp.bfloat16, batch_hint=8):
        self.input_shape = input_shape
        self.in_channels = in_channels
        self.out_channels = out_channels
        self.kernel_size = kernel_size
        self.dilation = dilation
        self.padding = padding
        self.stride = stride
        self.stream_dtype = stream_dtype   # bf16 default: halves xu+w HBM streams

        oh = (input_shape[0] + 2 * padding[0]
              - dilation[0] * (kernel_size[0] - 1) - 1) // stride[0] + 1
        ow = (input_shape[1] + 2 * padding[1]
              - dilation[1] * (kernel_size[1] - 1) - 1) // stride[1] + 1
        self.out_h, self.out_w = oh, ow
        self.D = in_channels * kernel_size[0] * kernel_size[1]
        self.L = oh * ow

        k1, k2 = jax.random.split(key)
        # PyTorch-layout parameters kept in f32: weights (1, D, L, O), bias (1, O, oh, ow).
        self.weights = xavier_uniform(k1, (1, self.D, self.L, out_channels))
        self.bias = xavier_uniform(k2, (1, out_channels, oh, ow))

        # Tiles chosen once; the dominant weight stream is transposed, cast and
        # zero padded ONCE here (never re-padded per forward).
        (self.tile_d, self.tile_l, self.D_pad, self.L_pad,
         self.vmem_limit) = choose_lc2d_tiles(self.D, self.L, out_channels,
                                              batch_hint, stream_dtype)
        w_odl = jnp.transpose(self.weights[0], (2, 0, 1)).astype(stream_dtype)  # (O, D, L)
        self.w_odl = jnp.pad(
            w_odl, ((0, 0), (0, self.D_pad - self.D), (0, self.L_pad - self.L)))
        b_ol = self.bias[0].reshape(out_channels, self.L).astype(jnp.float32)
        self.b_ol = jnp.pad(b_ol, ((0, 0), (0, self.L_pad - self.L)))

    def __call__(self, x):
        N = x.shape[0]
        xu, oh, ow = unfold_nchw(x, self.kernel_size, self.dilation,
                                 self.padding, self.stride)      # (N, D, L)
        # (N, D, L) is already the kernel layout -> no HBM transpose.  Only xu is
        # zero padded per call (zeros are inert in the reduction because the
        # weights' D/L padding is also zero).
        # TODO(synk): fold the zero pad of xu directly into the unfold scatter.
        xu = xu.astype(self.stream_dtype)
        if (self.D_pad, self.L_pad) != (self.D, self.L):
            xu = jnp.pad(xu, ((0, 0), (0, self.D_pad - self.D),
                              (0, self.L_pad - self.L)))
        out = locally_connected_2d_pallas(
            xu, self.w_odl, self.b_ol, tile_d=self.tile_d, tile_l=self.tile_l,
            vmem_limit_bytes=self.vmem_limit)                    # (N, O, L_pad) f32
        out = out[:, :, :self.L]
        # (N, O, L) is channel-major -> direct NCHW reshape (no transpose).
        return out.reshape(N, self.out_channels, oh, ow)


if __name__ == "__main__":
    key = jax.random.PRNGKey(0)
    k_x, k_mod = jax.random.split(key)

    # Small deterministic example: N=2, C=4, H=W=16, 3x3 kernel, stride 1, pad 1.
    N, C, H, W = 2, 4, 16, 16
    x = jax.random.normal(k_x, (N, C, H, W), jnp.float32)

    common = dict(input_shape=(H, W), in_channels=C, out_channels=8,
                  kernel_size=(3, 3), dilation=(1, 1), padding=(1, 1),
                  stride=(1, 1))

    # Strict-precision path (f32 streaming) for the correctness gate.
    mod_f32 = LocallyConnected2DPallas(k_mod, stream_dtype=jnp.float32, **common)
    out_f32 = jax.block_until_ready(jax.jit(lambda v: mod_f32(v))(x))

    # Default bandwidth-optimized path (bf16 streaming, f32 accumulate).
    mod_bf16 = LocallyConnected2DPallas(k_mod, **common)
    out_bf16 = jax.block_until_ready(jax.jit(lambda v: mod_bf16(v))(x))

    # Pure-JAX reference of the PyTorch forward (same weights for both modules).
    xu, oh, ow = unfold_nchw(x, (3, 3), (1, 1), (1, 1), (1, 1))
    ref = (xu[:, :, :, None] * mod_f32.weights).sum(axis=1)      # (N, L, O)
    ref = jnp.transpose(ref, (0, 2, 1)).reshape(N, 8, oh, ow) + mod_f32.bias

    assert out_f32.shape == (N, 8, oh, ow)
    assert jnp.allclose(out_f32, ref, rtol=1e-5, atol=1e-5)
    assert jnp.allclose(out_bf16, ref, rtol=5e-2, atol=1e-2)
    print("KERNEL_OK")
</pallas_src>

<mosaic_0001>
module attributes {stable_mosaic.version = 11 : i64} {
  func.func @_lc2d_kernel(%arg0: i32, %arg1: i32, %arg2: memref<2x40x128xf32, #tpu.memory_space<vmem>>, %arg3: memref<8x40x128xf32, #tpu.memory_space<vmem>>, %arg4: memref<8x128xf32, #tpu.memory_space<vmem>>, %arg5: memref<2x8x128xf32, #tpu.memory_space<vmem>>) attributes {dimension_semantics = [#tpu.dimension_semantics<parallel>, #tpu.dimension_semantics<arbitrary>], iteration_bounds = array<i64: 2, 1>, scalar_prefetch = 0 : i64, scratch_operands = 0 : i64, tpu.core_type = #tpu.core_type<tc>, window_params = [{transform_indices = @transform_0, window_bounds = array<i64: 2, 40, 128>}, {transform_indices = @transform_1, window_bounds = array<i64: 8, 40, 128>}, {transform_indices = @transform_2, window_bounds = array<i64: 8, 128>}, {transform_indices = @transform_3, window_bounds = array<i64: 2, 8, 128>}]} {
    %c0_i32 = arith.constant 0 : i32
    %0 = arith.cmpi eq, %arg1, %c0_i32 : i32
    %1 = arith.extui %0 : i1 to i32
    %c0_i32_0 = arith.constant 0 : i32
    %2 = arith.cmpi ne, %1, %c0_i32_0 : i32
    scf.if %2 {
      %c0_74 = arith.constant 0 : index
      %c0_75 = arith.constant 0 : index
      %101 = vector.load %arg4[%c0_74, %c0_75] : memref<8x128xf32, #tpu.memory_space<vmem>>, vector<8x128xf32>
      %102 = vector.shape_cast %101 : vector<8x128xf32> to vector<1x8x128xf32>
      %103 = vector.shape_cast %102 : vector<1x8x128xf32> to vector<1x8x128xf32>
      %104 = vector.broadcast %103 : vector<1x8x128xf32> to vector<2x8x128xf32>
      %c0_76 = arith.constant 0 : index
      %c0_77 = arith.constant 0 : index
      %c0_78 = arith.constant 0 : index
      %105 = vector.load %arg5[%c0_76, %c0_77, %c0_78] : memref<2x8x128xf32, #tpu.memory_space<vmem>>, vector<2x8x128xf32>
      tpu.vector_store %arg5[%c0_76, %c0_77, %c0_78], %104 {strides = array<i32>} : memref<2x8x128xf32, #tpu.memory_space<vmem>>, vector<2x8x128xf32>,
    } else {
    }
    %c0 = arith.constant 0 : index
    %c0_1 = arith.constant 0 : index
    %c0_2 = arith.constant 0 : index
    %3 = vector.load %arg2[%c0, %c0_1, %c0_2] : memref<2x40x128xf32, #tpu.memory_space<vmem>>, vector<1x40x128xf32>
    %4 = vector.shape_cast %3 : vector<1x40x128xf32> to vector<40x128xf32>
    %c0_3 = arith.constant 0 : index
    %c0_4 = arith.constant 0 : index
    %c0_5 = arith.constant 0 : index
    %5 = vector.load %arg3[%c0_3, %c0_4, %c0_5] : memref<8x40x128xf32, #tpu.memory_space<vmem>>, vector<1x40x128xf32>
    %6 = vector.shape_cast %5 : vector<1x40x128xf32> to vector<40x128xf32>
    %7 = arith.mulf %4, %6 : vector<40x128xf32>
    %cst = arith.constant dense<0.000000e+00> : vector<128xf32>
    %8 = vector.multi_reduction <add>, %7, %cst [0] : vector<40x128xf32> to vector<128xf32>
    %9 = vector.shape_cast %8 : vector<128xf32> to vector<1x128xf32>
    %c1 = arith.constant 1 : index
    %c0_6 = arith.constant 0 : index
    %c0_7 = arith.constant 0 : index
    %10 = vector.load %arg3[%c1, %c0_6, %c0_7] : memref<8x40x128xf32, #tpu.memory_space<vmem>>, vector<1x40x128xf32>
    %11 = vector.shape_cast %10 : vector<1x40x128xf32> to vector<40x128xf32>
    %12 = arith.mulf %4, %11 : vector<40x128xf32>
    %cst_8 = arith.constant dense<0.000000e+00> : vector<128xf32>
    %13 = vector.multi_reduction <add>, %12, %cst_8 [0] : vector<40x128xf32> to vector<128xf32>
    %14 = vector.shape_cast %13 : vector<128xf32> to vector<1x128xf32>
    %c2 = arith.constant 2 : index
    %c0_9 = arith.constant 0 : index
    %c0_10 = arith.constant 0 : index
    %15 = vector.load %arg3[%c2, %c0_9, %c0_10] : memref<8x40x128xf32, #tpu.memory_space<vmem>>, vector<1x40x128xf32>
    %16 = vector.shape_cast %15 : vector<1x40x128xf32> to vector<40x128xf32>
    %17 = arith.mulf %4, %16 : vector<40x128xf32>
    %cst_11 = arith.constant dense<0.000000e+00> : vector<128xf32>
    %18 = vector.multi_reduction <add>, %17, %cst_11 [0] : vector<40x128xf32> to vector<128xf32>
    %19 = vector.shape_cast %18 : vector<128xf32> to vector<1x128xf32>
    %c3 = arith.constant 3 : index
    %c0_12 = arith.constant 0 : index
    %c0_13 = arith.constant 0 : index
    %20 = vector.load %arg3[%c3, %c0_12, %c0_13] : memref<8x40x128xf32, #tpu.memory_space<vmem>>, vector<1x40x128xf32>
    %21 = vector.shape_cast %20 : vector<1x40x128xf32> to vector<40x128xf32>
    %22 = arith.mulf %4, %21 : vector<40x128xf32>
    %cst_14 = arith.constant dense<0.000000e+00> : vector<128xf32>
    %23 = vector.multi_reduction <add>, %22, %cst_14 [0] : vector<40x128xf32> to vector<128xf32>
    %24 = vector.shape_cast %23 : vector<128xf32> to vector<1x128xf32>
    %c4 = arith.constant 4 : index
    %c0_15 = arith.constant 0 : index
    %c0_16 = arith.constant 0 : index
    %25 = vector.load %arg3[%c4, %c0_15, %c0_16] : memref<8x40x128xf32, #tpu.memory_space<vmem>>, vector<1x40x128xf32>
    %26 = vector.shape_cast %25 : vector<1x40x128xf32> to vector<40x128xf32>
    %27 = arith.mulf %4, %26 : vector<40x128xf32>
    %cst_17 = arith.constant dense<0.000000e+00> : vector<128xf32>
    %28 = vector.multi_reduction <add>, %27, %cst_17 [0] : vector<40x128xf32> to vector<128xf32>
    %29 = vector.shape_cast %28 : vector<128xf32> to vector<1x128xf32>
    %c5 = arith.constant 5 : index
    %c0_18 = arith.constant 0 : index
    %c0_19 = arith.constant 0 : index
    %30 = vector.load %arg3[%c5, %c0_18, %c0_19] : memref<8x40x128xf32, #tpu.memory_space<vmem>>, vector<1x40x128xf32>
    %31 = vector.shape_cast %30 : vector<1x40x128xf32> to vector<40x128xf32>
    %32 = arith.mulf %4, %31 : vector<40x128xf32>
    %cst_20 = arith.constant dense<0.000000e+00> : vector<128xf32>
    %33 = vector.multi_reduction <add>, %32, %cst_20 [0] : vector<40x128xf32> to vector<128xf32>
    %34 = vector.shape_cast %33 : vector<128xf32> to vector<1x128xf32>
    %c6 = arith.constant 6 : index
    %c0_21 = arith.constant 0 : index
    %c0_22 = arith.constant 0 : index
    %35 = vector.load %arg3[%c6, %c0_21, %c0_22] : memref<8x40x128xf32, #tpu.memory_space<vmem>>, vector<1x40x128xf32>
    %36 = vector.shape_cast %35 : vector<1x40x128xf32> to vector<40x128xf32>
    %37 = arith.mulf %4, %36 : vector<40x128xf32>
    %cst_23 = arith.constant dense<0.000000e+00> : vector<128xf32>
    %38 = vector.multi_reduction <add>, %37, %cst_23 [0] : vector<40x128xf32> to vector<128xf32>
    %39 = vector.shape_cast %38 : vector<128xf32> to vector<1x128xf32>
    %c7 = arith.constant 7 : index
    %c0_24 = arith.constant 0 : index
    %c0_25 = arith.constant 0 : index
    %40 = vector.load %arg3[%c7, %c0_24, %c0_25] : memref<8x40x128xf32, #tpu.memory_space<vmem>>, vector<1x40x128xf32>
    %41 = vector.shape_cast %40 : vector<1x40x128xf32> to vector<40x128xf32>
    %42 = arith.mulf %4, %41 : vector<40x128xf32>
    %cst_26 = arith.constant dense<0.000000e+00> : vector<128xf32>
    %43 = vector.multi_reduction <add>, %42, %cst_26 [0] : vector<40x128xf32> to vector<128xf32>
    %44 = vector.shape_cast %43 : vector<128xf32> to vector<1x128xf32>
    %c0_27 = arith.constant 0 : index
    %c0_28 = arith.constant 0 : index
    %c0_29 = arith.constant 0 : index
    %45 = vector.load %arg5[%c0_27, %c0_28, %c0_29] : memref<2x8x128xf32, #tpu.memory_space<vmem>>, vector<1x8x128xf32>
    %46 = vector.shape_cast %45 : vector<1x8x128xf32> to vector<8x128xf32>
    %47 = tpu.concatenate %9, %14, %19, %24, %29, %34, %39, %44 in 0 : vector<1x128xf32>, vector<1x128xf32>, vector<1x128xf32>, vector<1x128xf32>, vector<1x128xf32>, vector<1x128xf32>, vector<1x128xf32>, vector<1x128xf32> -> vector<8x128xf32>
    %48 = arith.addf %46, %47 : vector<8x128xf32>
    %c0_30 = arith.constant 0 : index
    %c0_31 = arith.constant 0 : index
    %c0_32 = arith.constant 0 : index
    %49 = vector.load %arg5[%c0_30, %c0_31, %c0_32] : memref<2x8x128xf32, #tpu.memory_space<vmem>>, vector<1x8x128xf32>
    %50 = vector.shape_cast %49 : vector<1x8x128xf32> to vector<8x128xf32>
    %51 = vector.shape_cast %48 : vector<8x128xf32> to vector<1x8x128xf32>
    tpu.vector_store %arg5[%c0_30, %c0_31, %c0_32], %51 {strides = array<i32>} : memref<2x8x128xf32, #tpu.memory_space<vmem>>, vector<1x8x128xf32>,
    %c1_33 = arith.constant 1 : index
    %c0_34 = arith.constant 0 : index
    %c0_35 = arith.constant 0 : index
    %52 = vector.load %arg2[%c1_33, %c0_34, %c0_35] : memref<2x40x128xf32, #tpu.memory_space<vmem>>, vector<1x40x128xf32>
    %53 = vector.shape_cast %52 : vector<1x40x128xf32> to vector<40x128xf32>
    %c0_36 = arith.constant 0 : index
    %c0_37 = arith.constant 0 : index
    %c0_38 = arith.constant 0 : index
    %54 = vector.load %arg3[%c0_36, %c0_37, %c0_38] : memref<8x40x128xf32, #tpu.memory_space<vmem>>, vector<1x40x128xf32>
    %55 = vector.shape_cast %54 : vector<1x40x128xf32> to vector<40x128xf32>
    %56 = arith.mulf %53, %55 : vector<40x128xf32>
    %cst_39 = arith.constant dense<0.000000e+00> : vector<128xf32>
    %57 = vector.multi_reduction <add>, %56, %cst_39 [0] : vector<40x128xf32> to vector<128xf32>
    %58 = vector.shape_cast %57 : vector<128xf32> to vector<1x128xf32>
    %c1_40 = arith.constant 1 : index
    %c0_41 = arith.constant 0 : index
    %c0_42 = arith.constant 0 : index
    %59 = vector.load %arg3[%c1_40, %c0_41, %c0_42] : memref<8x40x128xf32, #tpu.memory_space<vmem>>, vector<1x40x128xf32>
    %60 = vector.shape_cast %59 : vector<1x40x128xf32> to vector<40x128xf32>
    %61 = arith.mulf %53, %60 : vector<40x128xf32>
    %cst_43 = arith.constant dense<0.000000e+00> : vector<128xf32>
    %62 = vector.multi_reduction <add>, %61, %cst_43 [0] : vector<40x128xf32> to vector<128xf32>
    %63 = vector.shape_cast %62 : vector<128xf32> to vector<1x128xf32>
    %c2_44 = arith.constant 2 : index
    %c0_45 = arith.constant 0 : index
    %c0_46 = arith.constant 0 : index
    %64 = vector.load %arg3[%c2_44, %c0_45, %c0_46] : memref<8x40x128xf32, #tpu.memory_space<vmem>>, vector<1x40x128xf32>
    %65 = vector.shape_cast %64 : vector<1x40x128xf32> to vector<40x128xf32>
    %66 = arith.mulf %53, %65 : vector<40x128xf32>
    %cst_47 = arith.constant dense<0.000000e+00> : vector<128xf32>
    %67 = vector.multi_reduction <add>, %66, %cst_47 [0] : vector<40x128xf32> to vector<128xf32>
    %68 = vector.shape_cast %67 : vector<128xf32> to vector<1x128xf32>
    %c3_48 = arith.constant 3 : index
    %c0_49 = arith.constant 0 : index
    %c0_50 = arith.constant 0 : index
    %69 = vector.load %arg3[%c3_48, %c0_49, %c0_50] : memref<8x40x128xf32, #tpu.memory_space<vmem>>, vector<1x40x128xf32>
    %70 = vector.shape_cast %69 : vector<1x40x128xf32> to vector<40x128xf32>
    %71 = arith.mulf %53, %70 : vector<40x128xf32>
    %cst_51 = arith.constant dense<0.000000e+00> : vector<128xf32>
    %72 = vector.multi_reduction <add>, %71, %cst_51 [0] : vector<40x128xf32> to vector<128xf32>
    %73 = vector.shape_cast %72 : vector<128xf32> to vector<1x128xf32>
    %c4_52 = arith.constant 4 : index
    %c0_53 = arith.constant 0 : index
    %c0_54 = arith.constant 0 : index
    %74 = vector.load %arg3[%c4_52, %c0_53, %c0_54] : memref<8x40x128xf32, #tpu.memory_space<vmem>>, vector<1x40x128xf32>
    %75 = vector.shape_cast %74 : vector<1x40x128xf32> to vector<40x128xf32>
    %76 = arith.mulf %53, %75 : vector<40x128xf32>
    %cst_55 = arith.constant dense<0.000000e+00> : vector<128xf32>
    %77 = vector.multi_reduction <add>, %76, %cst_55 [0] : vector<40x128xf32> to vector<128xf32>
    %78 = vector.shape_cast %77 : vector<128xf32> to vector<1x128xf32>
    %c5_56 = arith.constant 5 : index
    %c0_57 = arith.constant 0 : index
    %c0_58 = arith.constant 0 : index
    %79 = vector.load %arg3[%c5_56, %c0_57, %c0_58] : memref<8x40x128xf32, #tpu.memory_space<vmem>>, vector<1x40x128xf32>
    %80 = vector.shape_cast %79 : vector<1x40x128xf32> to vector<40x128xf32>
    %81 = arith.mulf %53, %80 : vector<40x128xf32>
    %cst_59 = arith.constant dense<0.000000e+00> : vector<128xf32>
    %82 = vector.multi_reduction <add>, %81, %cst_59 [0] : vector<40x128xf32> to vector<128xf32>
    %83 = vector.shape_cast %82 : vector<128xf32> to vector<1x128xf32>
    %c6_60 = arith.constant 6 : index
    %c0_61 = arith.constant 0 : index
    %c0_62 = arith.constant 0 : index
    %84 = vector.load %arg3[%c6_60, %c0_61, %c0_62] : memref<8x40x128xf32, #tpu.memory_space<vmem>>, vector<1x40x128xf32>
    %85 = vector.shape_cast %84 : vector<1x40x128xf32> to vector<40x128xf32>
    %86 = arith.mulf %53, %85 : vector<40x128xf32>
    %cst_63 = arith.constant dense<0.000000e+00> : vector<128xf32>
    %87 = vector.multi_reduction <add>, %86, %cst_63 [0] : vector<40x128xf32> to vector<128xf32>
    %88 = vector.shape_cast %87 : vector<128xf32> to vector<1x128xf32>
    %c7_64 = arith.constant 7 : index
    %c0_65 = arith.constant 0 : index
    %c0_66 = arith.constant 0 : index
    %89 = vector.load %arg3[%c7_64, %c0_65, %c0_66] : memref<8x40x128xf32, #tpu.memory_space<vmem>>, vector<1x40x128xf32>
    %90 = vector.shape_cast %89 : vector<1x40x128xf32> to vector<40x128xf32>
    %91 = arith.mulf %53, %90 : vector<40x128xf32>
    %cst_67 = arith.constant dense<0.000000e+00> : vector<128xf32>
    %92 = vector.multi_reduction <add>, %91, %cst_67 [0] : vector<40x128xf32> to vector<128xf32>
    %93 = vector.shape_cast %92 : vector<128xf32> to vector<1x128xf32>
    %c1_68 = arith.constant 1 : index
    %c0_69 = arith.constant 0 : index
    %c0_70 = arith.constant 0 : index
    %94 = vector.load %arg5[%c1_68, %c0_69, %c0_70] : memref<2x8x128xf32, #tpu.memory_space<vmem>>, vector<1x8x128xf32>
    %95 = vector.shape_cast %94 : vector<1x8x128xf32> to vector<8x128xf32>
    %96 = tpu.concatenate %58, %63, %68, %73, %78, %83, %88, %93 in 0 : vector<1x128xf32>, vector<1x128xf32>, vector<1x128xf32>, vector<1x128xf32>, vector<1x128xf32>, vector<1x128xf32>, vector<1x128xf32>, vector<1x128xf32> -> vector<8x128xf32>
    %97 = arith.addf %95, %96 : vector<8x128xf32>
    %c1_71 = arith.constant 1 : index
    %c0_72 = arith.constant 0 : index
    %c0_73 = arith.constant 0 : index
    %98 = vector.load %arg5[%c1_71, %c0_72, %c0_73] : memref<2x8x128xf32, #tpu.memory_space<vmem>>, vector<1x8x128xf32>
    %99 = vector.shape_cast %98 : vector<1x8x128xf32> to vector<8x128xf32>
    %100 = vector.shape_cast %97 : vector<8x128xf32> to vector<1x8x128xf32>
    tpu.vector_store %arg5[%c1_71, %c0_72, %c0_73], %100 {strides = array<i32>} : memref<2x8x128xf32, #tpu.memory_space<vmem>>, vector<1x8x128xf32>,
    return
  }
  func.func @transform_0(%arg0: i32, %arg1: i32) -> (i32, i32, i32) {
    %c0_i32 = arith.constant 0 : i32
    %c0_i32_0 = arith.constant 0 : i32
    return %c0_i32, %arg1, %arg0 : i32, i32, i32
  }
  func.func @transform_1(%arg0: i32, %arg1: i32) -> (i32, i32, i32) {
    %c0_i32 = arith.constant 0 : i32
    %c0_i32_0 = arith.constant 0 : i32
    return %c0_i32, %arg1, %arg0 : i32, i32, i32
  }
  func.func @transform_2(%arg0: i32, %arg1: i32) -> (i32, i32) {
    %c0_i32 = arith.constant 0 : i32
    %c0_i32_0 = arith.constant 0 : i32
    return %c0_i32, %arg0 : i32, i32
  }
  func.func @transform_3(%arg0: i32, %arg1: i32) -> (i32, i32, i32) {
    %c0_i32 = arith.constant 0 : i32
    %c0_i32_0 = arith.constant 0 : i32
    %c0_i32_1 = arith.constant 0 : i32
    return %c0_i32, %c0_i32_0, %arg0 : i32, i32, i32
  }
}

</mosaic_0001>

<bundles_post_ra>
// kernel: _lambda_.1
= control target key start
LH: loop header
LB: loop body
LE: loop exit
PB: predicated region body
PF: predicated region fallthrough
CT: control target
= control target key end

     0   :  { %s1197_s12 = smov 0   ;;  %s1199_s13 = smov 0   ;;  %s1719_s0 = inlined_call_operand.vmem [shape: f32[2,40,256], index: 0, kind: input, shape index: {}]   ;;  %s1720_s1 = inlined_call_operand.vmem [shape: f32[8,40,256], index: 1, kind: input, shape index: {}]   ;;  %s1721_s2 = inlined_call_operand.vmem [shape: f32[8,256], index: 2, kind: input, shape index: {}]   ;;  %s1722_s3 = inlined_call_operand.vmem [shape: f32[2,8,256], index: 3, kind: output, shape index: {}]  }
   0x1   :  { %s1201_s14 = smov 0   ;;  %s1203_s15 = smov 0  }
   0x2   :  { %s1205_s16 = smov 0  }
   0x3 LB: > { %s25_s17 = sadd.s32 1, %s1171_s15  ;;  %s1003_s18 = sadd.s32 4294967295, %s1175_s16   ;;  %s1175_s16 = sphi %s1205_s16, %s13_s16   ;;  %s1171_s15 = sphi %s1203_s15, %s1743_s15   ;;  %s1167_s14 = sphi %s1201_s14, %s1742_s14   ;;  %s1163_s13 = sphi %s1199_s13, %s1741_s13   ;;  %s1159_s12 = sphi %s1197_s12, %s1740_s12  }
   0x4   : > { %p27_p0 = scmp.ge.s32.totalorder %s25_s17, 2  ;;  %p41_p1 = scmp.ne.s32.totalorder %s1163_s13, %s1159_s12 }
   0x5   : > { %p42_p2 = scmp.eq.s32.totalorder %s1175_s16, 0  ;;  %p125_p4 = scmp.eq.s32.totalorder %s1003_s18, 1 }
   0x6   : > { %s1745_s17 = smov (%p27_p0, %s25_s17), 0  ;;  %s34_s21 = sadd.s32 1, %s1163_s13 }
   0x7   : > { %p1229_p3 = por %p42_p2, %p41_p1  ;;  %s30_s20 = ssub.s32 %s1171_s15, %s1745_s17 }
   0x8   : > { %p32_p5 = scmp.eq.s32.totalorder %s30_s20, 0  ;;  %p1236_p6 = por %p125_p4, %p41_p1 }
   0x9   : > { %p1006_p7 = scmp.ge.s32.totalorder %s1175_s16, 2 }
   0xa   : > { %s1241_s23 = scalar_select %p32_p5, %s1163_s13, %s34_s21  }
   0xb   : > { %147 = sbr.rel (%p1006_p7) target bundleno = 51 (0x33), region = 16 }
  0x12   : > { %150 = sbr.rel (!%p1229_p3) target bundleno = 27 (0x1b), region = 20  ;;  %s152_s24 = sand.u32 (%p1229_p3), 1, %s1163_s13  }
  0x13   : > { %s1007_s25 = sshll.u32 (%p1229_p3), %s1171_s15, 3  ;;  %s1093_s26 = smul.u32 (%p1229_p3), 80, %s152_s24 }
  0x14   : > { %s159_s29 = scalar_lea.vmem (%p1229_p3), %s1719_s0, %s1007_s25 }
  0x15   : > { %v205_v0 = vld [vmem:[%s159_s29] sm:$0xff] (%p1229_p3)  ;;  %v207_v1 = vld [vmem:[%s159_s29 + $0x10] sm:$0xff] (%p1229_p3)  ;;  %s154_s30 = scalar_lea.vmem (%p1229_p3), [#allocation2], %s1093_s26 }
  0x16   : > { %v209_v2 = vld [vmem:[%s159_s29 + $0x20] sm:$0xff] (%p1229_p3)  ;;  %v211_v3 = vld [vmem:[%s159_s29 + $0x30] sm:$0xff] (%p1229_p3)  ;;  %206 = vst [vmem:[%s154_s30] sm:$0xff] (%p1229_p3), %v205_v0  ;;  %208 = vst [vmem:[%s154_s30 + $0x8] sm:$0xff] (%p1229_p3), %v207_v1 }
  0x17   : > { %v213_v4 = vld [vmem:[%s159_s29 + $0x40] sm:$0xff] (%p1229_p3)  ;;  %v215_v5 = vld [vmem:[%s159_s29 + $0x50] sm:$0xff] (%p1229_p3)  ;;  %210 = vst [vmem:[%s154_s30 + $0x10] sm:$0xff] (%p1229_p3), %v209_v2  ;;  %212 = vst [vmem:[%s154_s30 + $0x18] sm:$0xff] (%p1229_p3), %v211_v3 }
  0x18   : > { %214 = vst [vmem:[%s154_s30 + $0x20] sm:$0xff] (%p1229_p3), %v213_v4  ;;  %216 = vst [vmem:[%s154_s30 + $0x28] sm:$0xff] (%p1229_p3), %v215_v5  ;;  %v217_v6 = vld [vmem:[%s159_s29 + $0x60] sm:$0xff] (%p1229_p3)  ;;  %v219_v7 = vld [vmem:[%s159_s29 + $0x70] sm:$0xff] (%p1229_p3) }
  0x19   : > { %v221_v8 = vld [vmem:[%s159_s29 + $0x80] sm:$0xff]  ;;  %218 = vst [vmem:[%s154_s30 + $0x30] sm:$0xff] %v217_v6  ;;  %220 = vst [vmem:[%s154_s30 + $0x38] sm:$0xff] %v219_v7  ;;  %v223_v9 = vld [vmem:[%s159_s29 + $0x90] sm:$0xff] }
  0x1a   : > { %222 = vst [vmem:[%s154_s30 + $0x40] sm:$0xff] %v221_v8  ;;  %224 = vst [vmem:[%s154_s30 + $0x48] sm:$0xff] %v223_v9 }
  0x1b PF: > { %230 = sbr.rel (!%p1229_p3) target bundleno = 51 (0x33), region = 58  ;;  %s232_s4 = sand.u32 (%p1229_p3), 1, %s1163_s13  }
  0x1c   : > { %s1008_s5 = sshll.u32 (%p1229_p3), %s1171_s15, 3  ;;  %s1094_s6 = smul.u32 (%p1229_p3), 320, %s232_s4 }
  0x1d   : > { %s1258_s9 = scalar_lea.vmem (%p1229_p3), %s1720_s1, %s1008_s5 }
  0x1e   : > { %v345_v10 = vld [vmem:[%s1258_s9] sm:$0xff] (%p1229_p3)  ;;  %v347_v11 = vld [vmem:[%s1258_s9 + $0x10] sm:$0xff] (%p1229_p3)  ;;  %s1266_s10 = scalar_lea.vmem (%p1229_p3), [#allocation3], %s1094_s6 }
  0x1f   : > { %v349_v12 = vld [vmem:[%s1258_s9 + $0x20] sm:$0xff] (%p1229_p3)  ;;  %v351_v13 = vld [vmem:[%s1258_s9 + $0x30] sm:$0xff] (%p1229_p3)  ;;  %346 = vst [vmem:[%s1266_s10] sm:$0xff] (%p1229_p3), %v345_v10  ;;  %348 = vst [vmem:[%s1266_s10 + $0x8] sm:$0xff] (%p1229_p3), %v347_v11 }
  0x20   : > { %v353_v14 = vld [vmem:[%s1258_s9 + $0x40] sm:$0xff] (%p1229_p3)  ;;  %v355_v15 = vld [vmem:[%s1258_s9 + $0x50] sm:$0xff] (%p1229_p3)  ;;  %350 = vst [vmem:[%s1266_s10 + $0x10] sm:$0xff] (%p1229_p3), %v349_v12  ;;  %352 = vst [vmem:[%s1266_s10 + $0x18] sm:$0xff] (%p1229_p3), %v351_v13 }
  0x21   : > { %354 = vst [vmem:[%s1266_s10 + $0x20] sm:$0xff] (%p1229_p3), %v353_v14  ;;  %356 = vst [vmem:[%s1266_s10 + $0x28] sm:$0xff] (%p1229_p3), %v355_v15  ;;  %v357_v16 = vld [vmem:[%s1258_s9 + $0x60] sm:$0xff] (%p1229_p3)  ;;  %v359_v17 = vld [vmem:[%s1258_s9 + $0x70] sm:$0xff] (%p1229_p3) }
  0x22   : > { %v361_v18 = vld [vmem:[%s1258_s9 + $0x80] sm:$0xff]  ;;  %358 = vst [vmem:[%s1266_s10 + $0x30] sm:$0xff] %v357_v16  ;;  %360 = vst [vmem:[%s1266_s10 + $0x38] sm:$0xff] %v359_v17  ;;  %v363_v19 = vld [vmem:[%s1258_s9 + $0x90] sm:$0xff] }
  0x23   : > { %362 = vst [vmem:[%s1266_s10 + $0x40] sm:$0xff] %v361_v18  ;;  %v365_v20 = vld [vmem:[%s1258_s9 + $0xa0] sm:$0xff]  ;;  %v367_v21 = vld [vmem:[%s1258_s9 + $0xb0] sm:$0xff]  ;;  %364 = vst [vmem:[%s1266_s10 + $0x48] sm:$0xff] %v363_v19 }
  0x24   : > { %366 = vst [vmem:[%s1266_s10 + $0x50] sm:$0xff] %v365_v20  ;;  %368 = vst [vmem:[%s1266_s10 + $0x58] sm:$0xff] %v367_v21  ;;  %v369_v22 = vld [vmem:[%s1258_s9 + $0xc0] sm:$0xff]  ;;  %v371_v23 = vld [vmem:[%s1258_s9 + $0xd0] sm:$0xff] }
  0x25   : > { %v373_v24 = vld [vmem:[%s1258_s9 + $0xe0] sm:$0xff]  ;;  %370 = vst [vmem:[%s1266_s10 + $0x60] sm:$0xff] %v369_v22  ;;  %372 = vst [vmem:[%s1266_s10 + $0x68] sm:$0xff] %v371_v23  ;;  %v375_v25 = vld [vmem:[%s1258_s9 + $0xf0] sm:$0xff] }
  0x26   : > { %374 = vst [vmem:[%s1266_s10 + $0x70] sm:$0xff] %v373_v24  ;;  %v377_v26 = vld [vmem:[%s1258_s9 + $0x100] sm:$0xff]  ;;  %v379_v27 = vld [vmem:[%s1258_s9 + $0x110] sm:$0xff]  ;;  %376 = vst [vmem:[%s1266_s10 + $0x78] sm:$0xff] %v375_v25 }
  0x27   : > { %378 = vst [vmem:[%s1266_s10 + $0x80] sm:$0xff] %v377_v26  ;;  %380 = vst [vmem:[%s1266_s10 + $0x88] sm:$0xff] %v379_v27  ;;  %v381_v28 = vld [vmem:[%s1258_s9 + $0x120] sm:$0xff]  ;;  %v383_v29 = vld [vmem:[%s1258_s9 + $0x130] sm:$0xff] }
  0x28   : > { %v385_v30 = vld [vmem:[%s1258_s9 + $0x140] sm:$0xff]  ;;  %382 = vst [vmem:[%s1266_s10 + $0x90] sm:$0xff] %v381_v28  ;;  %384 = vst [vmem:[%s1266_s10 + $0x98] sm:$0xff] %v383_v29  ;;  %v387_v31 = vld [vmem:[%s1258_s9 + $0x150] sm:$0xff] }
  0x29   : > { %386 = vst [vmem:[%s1266_s10 + $0xa0] sm:$0xff] %v385_v30  ;;  %v389_v32 = vld [vmem:[%s1258_s9 + $0x160] sm:$0xff]  ;;  %v391_v33 = vld [vmem:[%s1258_s9 + $0x170] sm:$0xff]  ;;  %388 = vst [vmem:[%s1266_s10 + $0xa8] sm:$0xff] %v387_v31 }
  0x2a   : > { %390 = vst [vmem:[%s1266_s10 + $0xb0] sm:$0xff] %v389_v32  ;;  %392 = vst [vmem:[%s1266_s10 + $0xb8] sm:$0xff] %v391_v33  ;;  %v393_v34 = vld [vmem:[%s1258_s9 + $0x180] sm:$0xff]  ;;  %v395_v35 = vld [vmem:[%s1258_s9 + $0x190] sm:$0xff] }
  0x2b   : > { %v397_v36 = vld [vmem:[%s1258_s9 + $0x1a0] sm:$0xff]  ;;  %394 = vst [vmem:[%s1266_s10 + $0xc0] sm:$0xff] %v393_v34  ;;  %396 = vst [vmem:[%s1266_s10 + $0xc8] sm:$0xff] %v395_v35  ;;  %v399_v37 = vld [vmem:[%s1258_s9 + $0x1b0] sm:$0xff] }
  0x2c   : > { %398 = vst [vmem:[%s1266_s10 + $0xd0] sm:$0xff] %v397_v36  ;;  %v401_v38 = vld [vmem:[%s1258_s9 + $0x1c0] sm:$0xff]  ;;  %v403_v39 = vld [vmem:[%s1258_s9 + $0x1d0] sm:$0xff]  ;;  %400 = vst [vmem:[%s1266_s10 + $0xd8] sm:$0xff] %v399_v37 }
  0x2d   : > { %402 = vst [vmem:[%s1266_s10 + $0xe0] sm:$0xff] %v401_v38  ;;  %404 = vst [vmem:[%s1266_s10 + $0xe8] sm:$0xff] %v403_v39  ;;  %v405_v40 = vld [vmem:[%s1258_s9 + $0x1e0] sm:$0xff]  ;;  %v407_v41 = vld [vmem:[%s1258_s9 + $0x1f0] sm:$0xff] }
  0x2e   : > { %v409_v42 = vld [vmem:[%s1258_s9 + $0x200] sm:$0xff]  ;;  %406 = vst [vmem:[%s1266_s10 + $0xf0] sm:$0xff] %v405_v40  ;;  %408 = vst [vmem:[%s1266_s10 + $0xf8] sm:$0xff] %v407_v41  ;;  %v411_v43 = vld [vmem:[%s1258_s9 + $0x210] sm:$0xff] }
  0x2f   : > { %410 = vst [vmem:[%s1266_s10 + $0x100] sm:$0xff] %v409_v42  ;;  %v413_v44 = vld [vmem:[%s1258_s9 + $0x220] sm:$0xff]  ;;  %v415_v45 = vld [vmem:[%s1258_s9 + $0x230] sm:$0xff]  ;;  %412 = vst [vmem:[%s1266_s10 + $0x108] sm:$0xff] %v411_v43 }
  0x30   : > { %414 = vst [vmem:[%s1266_s10 + $0x110] sm:$0xff] %v413_v44  ;;  %416 = vst [vmem:[%s1266_s10 + $0x118] sm:$0xff] %v415_v45  ;;  %v417_v46 = vld [vmem:[%s1258_s9 + $0x240] sm:$0xff]  ;;  %v419_v47 = vld [vmem:[%s1258_s9 + $0x250] sm:$0xff] }
  0x31   : > { %v421_v48 = vld [vmem:[%s1258_s9 + $0x260] sm:$0xff]  ;;  %418 = vst [vmem:[%s1266_s10 + $0x120] sm:$0xff] %v417_v46  ;;  %420 = vst [vmem:[%s1266_s10 + $0x128] sm:$0xff] %v419_v47  ;;  %v423_v49 = vld [vmem:[%s1258_s9 + $0x270] sm:$0xff] }
  0x32   : > { %422 = vst [vmem:[%s1266_s10 + $0x130] sm:$0xff] %v421_v48  ;;  %424 = vst [vmem:[%s1266_s10 + $0x138] sm:$0xff] %v423_v49 }
  0x33 PF: > { %p1009_p8 = scmp.ge.s32.totalorder %s1175_s16, 1  ;;  %p436_p9 = scmp.lt.s32.totalorder %s1175_s16, 3 }
  0x35   : > { %p437_p10 = pnand %p1009_p8, %p436_p9 }
  0x37   : > { %440 = sbr.rel (%p437_p10) target bundleno = 155 (0x9b), region = 100 }
  0x3e   : > { %s1345_s11 = sand.u32 1, %s1159_s12   ;;  %vm666_vm0 = vcmask 1040384   ;;  %vm668_vm1 = vcmask 1041408   ;;  %vm670_vm2 = vcmask 1042432   ;;  %vm672_vm3 = vcmask 1043456   ;;  %p482_p11 = scmp.lt.s32.totalorder %s1167_s14, 1 }
  0x3f   : > { %s1095_s18 = smul.u32 80, %s1345_s11  ;;  %vm674_vm4 = vcmask 1044480   ;;  %vm676_vm5 = vcmask 1045504   ;;  %vm678_vm6 = vcmask 1046528   ;;  %s1010_s28 = sshll.u32 %s1345_s11, 4 }
  0x40   : > { %s1096_s19 = smul.u32 320, %s1345_s11  ;;  %s1660_s29 = scalar_lea.vmem [#allocation4], %s1010_s28 }
  0x41   : > { %s1349_s20 = scalar_lea.vmem [#allocation2], %s1095_s18  ;;  %s1090_s30 = sshll.u32 (%p1236_p6), %s1167_s14, 3 }
  0x42   : > { %v1352_v50 = vld [vmem:[%s1349_s20] sm:$0xff]  ;;  %v1355_v51 = vld [vmem:[%s1349_s20 + $0x8] sm:$0xff]  ;;  %v1358_v52 = vld [vmem:[%s1349_s20 + $0x10] sm:$0xff]  ;;  %s1366_s12 = scalar_lea.vmem [#allocation3], %s1096_s19  ;;  %s867_s6 = scalar_lea.vmem (%p1236_p6), %s1722_s3, %s1090_s30 }
  0x43   : > { %v1361_v53 = vld [vmem:[%s1349_s20 + $0x18] sm:$0xff]  ;;  %v1364_v54 = vld [vmem:[%s1349_s20 + $0x20] sm:$0xff]  ;;  %s1609_s21 = scalar_select %p482_p11, %s1167_s14, 1 }
  0x44   : > { %v1369_v55 = vld [vmem:[%s1366_s12] sm:$0xff]  ;;  %v1372_v56 = vld [vmem:[%s1366_s12 + $0x8] sm:$0xff]  ;;  %v1375_v57 = vld [vmem:[%s1366_s12 + $0x10] sm:$0xff] }
  0x45   : > { %v1378_v58 = vld [vmem:[%s1366_s12 + $0x18] sm:$0xff]  ;;  %v503_v59 = vmul.f32 %v1369_v55, %v1352_v50  ;;  %v1383_v60 = vld [vmem:[%s1366_s12 + $0x20] sm:$0xff]  ;;  %v504_v61 = vmul.f32 %v1372_v56, %v1355_v51  ;;  %v505_v62 = vmul.f32 %v1375_v57, %v1358_v52  ;;  %v1390_v63 = vld [vmem:[%s1366_s12 + $0x28] sm:$0xff]  ;;  %s1011_s24 = sshll.u32 %s1609_s21, 3 }
  0x46   : > { %v1393_v0 = vld [vmem:[%s1366_s12 + $0x30] sm:$0xff]  ;;  %v506_v1 = vmul.f32 %v1378_v58, %v1361_v53  ;;  %v1398_v2 = vld [vmem:[%s1366_s12 + $0x38] sm:$0xff]  ;;  %v1401_v3 = vld [vmem:[%s1366_s12 + $0x40] sm:$0xff]  ;;  %v524_v5 = vmul.f32 %v1390_v63, %v1352_v50  ;;  %v507_v7 = vmul.f32 %v1383_v60, %v1364_v54  ;;  %s485_s27 = scalar_lea.vmem %s1721_s2, %s1011_s24 }
  0x47   : > { %v1404_v4 = vld [vmem:[%s1366_s12 + $0x48] sm:$0xff]  ;;  %v525_v6 = vmul.f32 %v1393_v0, %v1355_v51  ;;  %v508_v8 = vadd.f32 %v504_v61, %v503_v59  ;;  %v526_v9 = vmul.f32 %v1398_v2, %v1358_v52  ;;  %v527_v10 = vmul.f32 %v1401_v3, %v1361_v53  ;;  %v1417_v11 = vld [vmem:[%s1366_s12 + $0x50] sm:$0xff]  ;;  %v1420_v12 = vld [vmem:[%s1366_s12 + $0x58] sm:$0xff] }
  0x48   : > { %v528_v13 = vmul.f32 %v1404_v4, %v1364_v54  ;;  %v1425_v15 = vld [vmem:[%s1366_s12 + $0x60] sm:$0xff]  ;;  %v1428_v16 = vld [vmem:[%s1366_s12 + $0x68] sm:$0xff]  ;;  %v1431_v17 = vld [vmem:[%s1366_s12 + $0x70] sm:$0xff]  ;;  %v545_v18 = vmul.f32 %v1417_v11, %v1352_v50  ;;  %v546_v19 = vmul.f32 %v1420_v12, %v1355_v51 }
  0x49   : > { %v529_v14 = vadd.f32 %v525_v6, %v524_v5  ;;  %v509_v20 = vadd.f32 %v508_v8, %v505_v62  ;;  %v547_v21 = vmul.f32 %v1425_v15, %v1358_v52  ;;  %v548_v22 = vmul.f32 %v1428_v16, %v1361_v53  ;;  %v1444_v24 = vld [vmem:[%s1366_s12 + $0x78] sm:$0xff]  ;;  %v1447_v25 = vld [vmem:[%s1366_s12 + $0x80] sm:$0xff]  ;;  %v1450_v26 = vld [vmem:[%s1366_s12 + $0x88] sm:$0xff] }
  0x4a   : > { %v549_v23 = vmul.f32 %v1431_v17, %v1364_v54  ;;  %v550_v28 = vadd.f32 %v546_v19, %v545_v18  ;;  %v1453_v29 = vld [vmem:[%s1366_s12 + $0x90] sm:$0xff]  ;;  %v1456_v30 = vld [vmem:[%s1366_s12 + $0x98] sm:$0xff]  ;;  %v566_v31 = vmul.f32 %v1444_v24, %v1352_v50  ;;  %v567_v32 = vmul.f32 %v1447_v25, %v1355_v51  ;;  %v1463_v33 = vld [vmem:[%s1366_s12 + $0xa0] sm:$0xff] }
  0x4b   : > { %v530_v27 = vadd.f32 %v529_v14, %v526_v9  ;;  %v510_v34 = vadd.f32 %v509_v20, %v506_v1  ;;  %v568_v35 = vmul.f32 %v1450_v26, %v1358_v52  ;;  %v569_v36 = vmul.f32 %v1453_v29, %v1361_v53  ;;  %v1472_v38 = vld [vmem:[%s1366_s12 + $0xa8] sm:$0xff]  ;;  %v1475_v39 = vld [vmem:[%s1366_s12 + $0xb0] sm:$0xff]  ;;  %v1478_v40 = vld [vmem:[%s1366_s12 + $0xb8] sm:$0xff] }
  0x4c   : > { %v570_v37 = vmul.f32 %v1456_v30, %v1364_v54  ;;  %v551_v42 = vadd.f32 %v550_v28, %v547_v21  ;;  %v571_v43 = vadd.f32 %v567_v32, %v566_v31  ;;  %v1481_v44 = vld [vmem:[%s1366_s12 + $0xc0] sm:$0xff]  ;;  %v587_v45 = vmul.f32 %v1463_v33, %v1352_v50  ;;  %v1486_v46 = vld [vmem:[%s1366_s12 + $0xc8] sm:$0xff]  ;;  %v1489_v47 = vld [vmem:[%s1366_s12 + $0xd0] sm:$0xff] }
  0x4d   : > { %v531_v41 = vadd.f32 %v530_v27, %v527_v10  ;;  %v511_v48 = vadd.f32 %v510_v34, %v507_v7  ;;  %v588_v49 = vmul.f32 %v1472_v38, %v1355_v51  ;;  %v589_v59 = vmul.f32 %v1475_v39, %v1358_v52  ;;  %v1498_v62 = vld [vmem:[%s1366_s12 + $0xd8] sm:$0xff]  ;;  %v1503_v7 = vld [vmem:[%s1366_s12 + $0xe0] sm:$0xff]  ;;  %v1506_v9 = vld [vmem:[%s1366_s12 + $0xe8] sm:$0xff] }
  0x4e   : > { %v590_v61 = vmul.f32 %v1478_v40, %v1361_v53  ;;  %v552_v5 = vadd.f32 %v551_v42, %v548_v22  ;;  %v572_v6 = vadd.f32 %v571_v43, %v568_v35  ;;  %v591_v8 = vmul.f32 %v1481_v44, %v1364_v54  ;;  %1730 = vst [vmem:[#allocation5_spill] sm:$0xff] %v1506_v9  ;;  %v1515_v27 = vld [vmem:[%s1366_s12 + $0xf0] sm:$0xff]  ;;  %v1518_v28 = vld [vmem:[%s1366_s12 + $0xf8] sm:$0xff]  ;;  %v1525_v43 = vld [vmem:[%s1366_s12 + $0x100] sm:$0xff] }
  0x4f   : > { %v532_v1 = vadd.f32 %v531_v41, %v528_v13  ;;  %v512_v10 = vrot.slane %v511_v48, 4  ;;  %v592_v14 = vadd.f32 %v588_v49, %v587_v45  ;;  %v608_v18 = vmul.f32 %v1486_v46, %v1352_v50  ;;  %1731 = vst [vmem:[#allocation6_spill] sm:$0xff] %v1518_v28  ;;  %1732 = vst [vmem:[#allocation7_spill] sm:$0xff] %v1525_v43  ;;  %v1528_v45 = vld [vmem:[%s1366_s12 + $0x108] sm:$0xff] }
  0x50   : > { %v609_v19 = vmul.f32 %v1489_v47, %v1355_v51  ;;  %v553_v20 = vadd.f32 %v552_v5, %v549_v23  ;;  %v573_v21 = vadd.f32 %v572_v6, %v569_v36  ;;  %v610_v22 = vmul.f32 %v1498_v62, %v1358_v52  ;;  %1733 = vst [vmem:[#allocation8_spill] sm:$0xff] %v1528_v45 }
  0x51   : > { %v533_v13 = vrot.slane %v532_v1, 4  ;;  %v513_v31 = vadd.f32 %v512_v10, %v511_v48  ;;  %v593_v32 = vadd.f32 %v592_v14, %v589_v59  ;;  %v611_v34 = vmul.f32 %v1503_v7, %v1361_v53 }
  0x52   : > { %v612_v35 = vmul.f32 %v1506_v9, %v1364_v54  ;;  %v554_v42 = vrot.slane %v553_v20, 4  ;;  %v574_v23 = vadd.f32 %v573_v21, %v570_v37  ;;  %v613_v36 = vadd.f32 %v609_v19, %v608_v18  ;;  %v1535_v37 = vld [vmem:[%s1366_s12 + $0x110] sm:$0xff] }
  0x53   : > { %v534_v41 = vadd.f32 %v533_v13, %v532_v1  ;;  %v514_v49 = vrot.slane %v513_v31, 2  ;;  %v594_v5 = vadd.f32 %v593_v32, %v590_v61  ;;  %v629_v48 = vmul.f32 %v1515_v27, %v1352_v50  ;;  %1734 = vst [vmem:[#allocation9_spill] sm:$0xff] %v1535_v37 }
  0x54   : > { %v630_v59 = vmul.f32 %v1518_v28, %v1355_v51  ;;  %v555_v10 = vadd.f32 %v554_v42, %v553_v20  ;;  %v575_v1 = vrot.slane %v574_v23, 4  ;;  %v614_v14 = vadd.f32 %v613_v36, %v610_v22  ;;  %v1542_v22 = vld [vmem:[%s1366_s12 + $0x118] sm:$0xff]  ;;  %v1547_v28 = vld [vmem:[%s1366_s12 + $0x120] sm:$0xff] }
  0x55   : > { %v535_v6 = vrot.slane %v534_v41, 2  ;;  %v515_v18 = vadd.f32 %v514_v49, %v513_v31  ;;  %v595_v19 = vadd.f32 %v594_v5, %v591_v8  ;;  %v631_v61 = vmul.f32 %v1525_v43, %v1358_v52 }
  0x56   : > { %v632_v13 = vmul.f32 %v1528_v45, %v1361_v53  ;;  %v556_v32 = vrot.slane %v555_v10, 2  ;;  %v576_v9 = vadd.f32 %v575_v1, %v574_v23  ;;  %v615_v20 = vadd.f32 %v614_v14, %v611_v34  ;;  %v1553_v1 = vld [vmem:[%s1366_s12 + $0x130] sm:$0xff] }
  0x57   : > { %v536_v21 = vadd.f32 %v535_v6, %v534_v41  ;;  %v516_v42 = vrot.slane %v515_v18, 1  ;;  %v596_v36 = vrot.slane %v595_v19, 4  ;;  %v633_v8 = vmul.f32 %v1535_v37, %v1364_v54  ;;  %v1550_v41 = vld [vmem:[%s1366_s12 + $0x128] sm:$0xff] }
  0x58   : > { %v634_v31 = vadd.f32 %v630_v59, %v629_v48  ;;  %v557_v5 = vadd.f32 %v556_v32, %v555_v10  ;;  %v577_v43 = vrot.slane %v576_v9, 2  ;;  %v616_v45 = vadd.f32 %v615_v20, %v612_v35  ;;  %v1558_v35 = vld [vmem:[%s1366_s12 + $0x138] sm:$0xff] }
  0x59   : > { %v537_v49 = vrot.slane %v536_v21, 1  ;;  %v517_v34 = vadd.f32 %v516_v42, %v515_v18  ;;  %v597_v23 = vadd.f32 %v596_v36, %v595_v19  ;;  %v650_v14 = vmul.f32 %v1542_v22, %v1352_v50 }
  0x5a   : > { %v635_v6 = vadd.f32 %v634_v31, %v631_v61  ;;  %v558_v59 = vrot.slane %v557_v5, 1  ;;  %v578_v37 = vadd.f32 %v577_v43, %v576_v9  ;;  %v617_v10 = vrot.slane %v616_v45, 4  ;;  %v1565_v61 = vld [vmem:[%s1349_s20 + $0x28] sm:$0xff]  ;;  %v1572_v31 = vld [vmem:[%s1349_s20 + $0x30] sm:$0xff] }
  0x5b   : > { %v538_v48 = vadd.f32 %v537_v49, %v536_v21  ;;  %v598_v32 = vrot.slane %v597_v23, 2  ;;  %v651_v18 = vmul.f32 %v1547_v28, %v1355_v51  ;;  %v652_v19 = vmul.f32 %v1550_v41, %v1358_v52  ;;  %v1575_v52 = vld [vmem:[%s1349_s20 + $0x38] sm:$0xff] }
  0x5c   : > { %v636_v20 = vadd.f32 %v635_v6, %v632_v13  ;;  %v559_v50 = vadd.f32 %v558_v59, %v557_v5  ;;  %v579_v21 = vrot.slane %v578_v37, 1  ;;  %v618_v9 = vadd.f32 %v617_v10, %v616_v45  ;;  %v1579_v45 = vld [vmem:[%s1349_s20 + $0x40] sm:$0xff] }
  0x5d   : > { %v653_v43 = vmul.f32 %v1553_v1, %v1361_v53  ;;  %v599_v42 = vadd.f32 %v598_v32, %v597_v23  ;;  %v654_v13 = vmul.f32 %v1558_v35, %v1364_v54  ;;  %v655_v51 = vadd.f32 %v651_v18, %v650_v14  ;;  %v1585_v14 = vld [vmem:[%s1349_s20 + $0x48] sm:$0xff] }
  0x5e   : > { %v637_v36 = vadd.f32 %v636_v20, %v633_v8  ;;  %v580_v49 = vadd.f32 %v579_v21, %v578_v37  ;;  %v619_v6 = vrot.slane %v618_v9, 2  ;;  %v667_v5 = vsel %vm666_vm0, %v517_v34, %v538_v48 }
  0x5f   : > { %v693_v53 = vmul.f32 %v1565_v61, %v1369_v55  ;;  %v600_v23 = vrot.slane %v599_v42, 1  ;;  %v656_v59 = vadd.f32 %v655_v51, %v652_v19  ;;  %v669_v54 = vsel %vm668_vm1, %v667_v5, %v559_v50 }
  0x60   : > { %v638_v8 = vrot.slane %v637_v36, 4  ;;  %v620_v10 = vadd.f32 %v619_v6, %v618_v9  ;;  %v671_v32 = vsel %vm670_vm2, %v669_v54, %v580_v49  ;;  %v694_v37 = vmul.f32 %v1572_v31, %v1372_v56 }
  0x61   : > { %v695_v34 = vmul.f32 %v1575_v52, %v1375_v57  ;;  %v601_v48 = vadd.f32 %v600_v23, %v599_v42  ;;  %v657_v20 = vadd.f32 %v656_v59, %v653_v43  ;;  %v696_v18 = vmul.f32 %v1579_v45, %v1378_v58 }
  0x62   : > { %v639_v55 = vadd.f32 %v638_v8, %v637_v36  ;;  %v621_v19 = vrot.slane %v620_v10, 1  ;;  %v697_v50 = vmul.f32 %v1585_v14, %v1383_v60  ;;  %v698_v21 = vadd.f32 %v694_v37, %v693_v53 }
  0x63   : > { %v713_v56 = vmul.f32 %v1565_v61, %v1390_v63  ;;  %v658_v51 = vadd.f32 %v657_v20, %v654_v13  ;;  %v673_v57 = vsel %vm672_vm3, %v671_v32, %v601_v48  ;;  %v714_v42 = vmul.f32 %v1572_v31, %v1393_v0 }
  0x64   : > { %v640_v9 = vrot.slane %v639_v55, 2  ;;  %v622_v36 = vadd.f32 %v621_v19, %v620_v10  ;;  %v699_v43 = vadd.f32 %v698_v21, %v695_v34  ;;  %v715_v58 = vmul.f32 %v1575_v52, %v1398_v2 }
  0x65   : > { %v716_v49 = vmul.f32 %v1579_v45, %v1401_v3  ;;  %v659_v63 = vrot.slane %v658_v51, 4  ;;  %v717_v13 = vmul.f32 %v1585_v14, %v1404_v4  ;;  %v718_v6 = vadd.f32 %v714_v42, %v713_v56 }
  0x66   : > { %v641_v60 = vadd.f32 %v640_v9, %v639_v55  ;;  %v675_v0 = vsel %vm674_vm4, %v673_v57, %v622_v36  ;;  %v700_v5 = vadd.f32 %v699_v43, %v696_v18  ;;  %v733_v53 = vmul.f32 %v1565_v61, %v1417_v11  ;;  %v1644_v43 = vld [vmem:[%s485_s27] sm:$0xff] }
  0x67   : > { %v734_v2 = vmul.f32 %v1572_v31, %v1420_v12  ;;  %v660_v23 = vadd.f32 %v659_v63, %v658_v51  ;;  %v719_v8 = vadd.f32 %v718_v6, %v715_v58  ;;  %v735_v59 = vmul.f32 %v1575_v52, %v1425_v15 }
  0x68   : > { %v642_v3 = vrot.slane %v641_v60, 1  ;;  %v701_v54 = vadd.f32 %v700_v5, %v697_v50  ;;  %v736_v4 = vmul.f32 %v1579_v45, %v1428_v16  ;;  %v737_v10 = vmul.f32 %v1585_v14, %v1431_v17 }
  0x69   : > { %v738_v32 = vadd.f32 %v734_v2, %v733_v53  ;;  %v661_v11 = vrot.slane %v660_v23, 2  ;;  %v720_v34 = vadd.f32 %v719_v8, %v716_v49  ;;  %v753_v12 = vmul.f32 %v1565_v61, %v1444_v24 }
  0x6a   : > { %v643_v37 = vadd.f32 %v642_v3, %v641_v60  ;;  %v702_v48 = vrot.slane %v701_v54, 4  ;;  %v754_v15 = vmul.f32 %v1572_v31, %v1447_v25  ;;  %v755_v16 = vmul.f32 %v1575_v52, %v1450_v26 }
  0x6b   : > { %v739_v55 = vadd.f32 %v738_v32, %v735_v59  ;;  %v662_v20 = vadd.f32 %v661_v11, %v660_v23  ;;  %v721_v18 = vadd.f32 %v720_v34, %v717_v13  ;;  %v756_v50 = vmul.f32 %v1579_v45, %v1453_v29 }
  0x6c   : > { %v677_v17 = vsel %vm676_vm5, %v675_v0, %v643_v37  ;;  %v703_v19 = vadd.f32 %v702_v48, %v701_v54  ;;  %v758_v21 = vadd.f32 %v754_v15, %v753_v12  ;;  %v773_v26 = vmul.f32 %v1565_v61, %v1463_v33  ;;  %v1735_v12 = vld [vmem:[#allocation6_spill] sm:$0xff]  ;;  %v1736_v48 = vld [vmem:[#allocation7_spill] sm:$0xff] }
  0x6d   : > { %v740_v24 = vadd.f32 %v739_v55, %v736_v4  ;;  %v663_v56 = vrot.slane %v662_v20, 1  ;;  %v722_v25 = vrot.slane %v721_v18, 4  ;;  %v774_v9 = vmul.f32 %v1572_v31, %v1472_v38 }
  0x6e   : > { %v704_v51 = vrot.slane %v703_v19, 2  ;;  %v757_v42 = vmul.f32 %v1585_v14, %v1456_v30  ;;  %v759_v36 = vadd.f32 %v758_v21, %v755_v16  ;;  %v775_v49 = vmul.f32 %v1575_v52, %v1475_v39 }
  0x6f   : > { %v741_v57 = vadd.f32 %v740_v24, %v737_v10  ;;  %v664_v58 = vadd.f32 %v663_v56, %v662_v20  ;;  %v723_v29 = vadd.f32 %v722_v25, %v721_v18  ;;  %v776_v33 = vmul.f32 %v1579_v45, %v1478_v40  ;;  %v1737_v20 = vld [vmem:[#allocation5_spill] sm:$0xff]  ;;  %v1738_v24 = vld [vmem:[#allocation8_spill] sm:$0xff] }
  0x70   : > { %v705_v60 = vadd.f32 %v704_v51, %v703_v19  ;;  %v760_v38 = vadd.f32 %v759_v36, %v756_v50  ;;  %v778_v13 = vadd.f32 %v774_v9, %v773_v26  ;;  %v793_v30 = vmul.f32 %v1565_v61, %v1486_v46  ;;  %v1739_v51 = vld [vmem:[#allocation9_spill] sm:$0xff] }
  0x71   : > { %v742_v63 = vrot.slane %v741_v57, 4  ;;  %v679_v6 = vsel %vm678_vm6, %v677_v17, %v664_v58  ;;  %v724_v0 = vrot.slane %v723_v29, 2  ;;  %v794_v5 = vmul.f32 %v1572_v31, %v1489_v47 }
  0x72   : > { %v680_v53 = vadd.f32 %v679_v6, %v1644_v43  ;;  %v706_v2 = vrot.slane %v705_v60, 1  ;;  %v761_v3 = vadd.f32 %v760_v38, %v757_v42  ;;  %v777_v40 = vmul.f32 %v1585_v14, %v1481_v44 }
  0x73   : > { %v743_v39 = vadd.f32 %v742_v63, %v741_v57  ;;  %v725_v23 = vadd.f32 %v724_v0, %v723_v29  ;;  %v779_v8 = vadd.f32 %v778_v13, %v775_v49  ;;  %v795_v59 = vmul.f32 %v1575_v52, %v1498_v62 }
  0x74   : > { %681 = vst [vmem:[%s1660_s29] sm:$0xff] %v680_v53  ;;  %v707_v46 = vadd.f32 %v706_v2, %v705_v60  ;;  %v762_v47 = vrot.slane %v761_v3, 4  ;;  %v796_v4 = vmul.f32 %v1579_v45, %v1503_v7  ;;  %v798_v37 = vadd.f32 %v794_v5, %v793_v30 }
  0x75   : > { %v744_v54 = vrot.slane %v743_v39, 2  ;;  %v726_v10 = vrot.slane %v725_v23, 1  ;;  %v780_v32 = vadd.f32 %v779_v8, %v776_v33  ;;  %v813_v44 = vmul.f32 %v1565_v61, %v1515_v27 }
  0x76   : > { %v763_v34 = vadd.f32 %v762_v47, %v761_v3  ;;  %v814_v62 = vmul.f32 %v1572_v31, %v1735_v12  ;;  %v815_v55 = vmul.f32 %v1575_v52, %v1736_v48  ;;  %v797_v17 = vmul.f32 %v1585_v14, %v1737_v20 }
  0x77   : > { %v745_v11 = vadd.f32 %v744_v54, %v743_v39  ;;  %v727_v15 = vadd.f32 %v726_v10, %v725_v23  ;;  %v781_v16 = vadd.f32 %v780_v32, %v777_v40  ;;  %v799_v7 = vadd.f32 %v798_v37, %v795_v59 }
  0x78   : > { %v764_v19 = vrot.slane %v763_v34, 2  ;;  %v816_v50 = vmul.f32 %v1579_v45, %v1738_v24  ;;  %v818_v27 = vadd.f32 %v814_v62, %v813_v44  ;;  %v833_v25 = vmul.f32 %v1565_v61, %v1542_v22 }
  0x79   : > { %v746_v18 = vrot.slane %v745_v11, 1  ;;  %v782_v21 = vrot.slane %v781_v16, 4  ;;  %v800_v56 = vadd.f32 %v799_v7, %v796_v4  ;;  %v834_v26 = vmul.f32 %v1572_v31, %v1547_v28 }
  0x7a   : > { %v765_v9 = vadd.f32 %v764_v19, %v763_v34  ;;  %v817_v57 = vmul.f32 %v1585_v14, %v1739_v51  ;;  %v819_v42 = vadd.f32 %v818_v27, %v815_v55  ;;  %v835_v36 = vmul.f32 %v1575_v52, %v1550_v41 }
  0x7b   : > { %v783_v58 = vadd.f32 %v782_v21, %v781_v16  ;;  %v801_v29 = vadd.f32 %v800_v56, %v797_v17  ;;  %v836_v60 = vmul.f32 %v1579_v45, %v1553_v1  ;;  %v838_v63 = vadd.f32 %v834_v26, %v833_v25  ;;  %v897_v55 = vld [vmem:[%s1660_s29] sm:$0xff] (%p1236_p6) }
  0x7c   : > { %v766_v49 = vrot.slane %v765_v9, 1  ;;  %v820_v33 = vadd.f32 %v819_v42, %v816_v50  ;;  %v747_v22 = vadd.f32 %v746_v18, %v745_v11  ;;  %v837_v31 = vmul.f32 %v1585_v14, %v1558_v35  ;;  %898 = vst [vmem:[%s867_s6] sm:$0xff] (%p1236_p6), %v897_v55 }
  0x7d   : > { %v784_v61 = vrot.slane %v783_v58, 2  ;;  %v802_v38 = vrot.slane %v801_v29, 4  ;;  %v839_v13 = vadd.f32 %v838_v63, %v835_v36  ;;  %v850_v6 = vsel %vm666_vm0, %v707_v46, %v727_v15 }
  0x7e   : > { %v821_v28 = vadd.f32 %v820_v33, %v817_v57  ;;  %v767_v52 = vadd.f32 %v766_v49, %v765_v9  ;;  %v851_v1 = vsel %vm668_vm1, %v850_v6, %v747_v22 }
  0x7f   : > { %v785_v0 = vadd.f32 %v784_v61, %v783_v58  ;;  %v803_v41 = vadd.f32 %v802_v38, %v801_v29  ;;  %v840_v5 = vadd.f32 %v839_v13, %v836_v60 }
  0x80   : > { %v822_v30 = vrot.slane %v821_v28, 4  ;;  %v852_v35 = vsel %vm670_vm2, %v851_v1, %v767_v52 }
  0x81   : > { %v786_v53 = vrot.slane %v785_v0, 1  ;;  %v804_v2 = vrot.slane %v803_v41, 2  ;;  %v841_v39 = vadd.f32 %v840_v5, %v837_v31 }
  0x82   : > { %v823_v45 = vadd.f32 %v822_v30, %v821_v28 }
  0x83   : > { %v787_v3 = vadd.f32 %v786_v53, %v785_v0  ;;  %v805_v23 = vadd.f32 %v804_v2, %v803_v41  ;;  %v842_v8 = vrot.slane %v841_v39, 4 }
  0x84   : > { %v824_v40 = vrot.slane %v823_v45, 2 }
  0x85   : > { %v806_v14 = vrot.slane %v805_v23, 1  ;;  %v843_v46 = vadd.f32 %v842_v8, %v841_v39  ;;  %v853_v47 = vsel %vm672_vm3, %v852_v35, %v787_v3 }
  0x86   : > { %v825_v59 = vadd.f32 %v824_v40, %v823_v45 }
  0x87   : > { %v807_v54 = vadd.f32 %v806_v14, %v805_v23  ;;  %v844_v10 = vrot.slane %v843_v46, 2 }
  0x88   : > { %v826_v4 = vrot.slane %v825_v59, 1 }
  0x89   : > { %v845_v37 = vadd.f32 %v844_v10, %v843_v46  ;;  %v854_v44 = vsel %vm674_vm4, %v853_v47, %v807_v54 }
  0x8a   : > { %v827_v32 = vadd.f32 %v826_v4, %v825_v59 }
  0x8b   : > { %v846_v11 = vrot.slane %v845_v37, 1 }
  0x8c   : > { %v855_v34 = vsel %vm676_vm5, %v854_v44, %v827_v32  ;;  %865 = sbr.rel (!%p1236_p6) target bundleno = 155 (0x9b), region = 116 }
  0x8d   : > { %v847_v12 = vadd.f32 %v846_v11, %v845_v37 }
  0x8f   : > { %v856_v62 = vsel %vm678_vm6, %v855_v34, %v847_v12 }
  0x90   : > { %v857_v48 = vadd.f32 %v856_v62, %v1644_v43 }
  0x92   : > { %1088 = vst [vmem:[%s1660_s29 + $0x8] sm:$0xff] %v857_v48 }
  0x99   : > { %v899_v15 = vld [vmem:[%s1660_s29 + $0x8] sm:$0xff] }
  0x9a   : > { %900 = vst [vmem:[%s867_s6 + $0x10] sm:$0xff] %v899_v15 }
  0x9b PF: > { %s13_s16 = sadd.s32 1, %s1175_s16   ;;  %s1740_s12 = smov %s1163_s13 }
  0x9c   : > { %p10_p12 = scmp.ge.s32.totalorder %s13_s16, 4   ;;  %s1741_s13 = smov %s1241_s23 }
  0x9d   : > { %s1742_s14 = smov %s1171_s15  ;;  %s1743_s15 = smov %s1745_s17 }
  0x9e   :  { %12 = sbr.rel (!%p10_p12) target bundleno = 3 (0x3), region = 205 }

</bundles_post_ra>
